<compile_context>
chip_gen: v7x
topology: tpu7x:2x2x1
jax: 0.10.0
libtpu: 0.0.40
codegen_flags: <defaults>
</compile_context>

<pallas_src>
import numpy as np
import jax
import jax.numpy as jnp
from jax.experimental import pallas as pl
from jax.experimental.pallas import tpu as pltpu


# --------------------------------------------------------------------------- #
# Helpers                                                                      #
# --------------------------------------------------------------------------- #
def _round_up(x, m):
    return ((x + m - 1) // m) * m


def _vmem_capacity_bytes():
    try:
        cap = int(pltpu.get_tpu_info().vmem_capacity_bytes)
        if cap > 0:
            return cap
    except Exception:
        pass
    return 64 << 20  # conservative fallback (v7x figure)


def _complex_sigmoid(zr, zi):
    """Numerically stable sigmoid(zr + i*zi) = 1/(1+exp(-z)); returns (re, im).

    zr >= 0:  sigma = conj(d)/|d|^2,         d = 1 + e^{-zr}(cos zi - i sin zi)
    zr <  0:  sigma = e^{zr}*conj(d)/|d|^2,  d = e^{zr} + cos zi - i sin zi
    (Genuine poles at z = i*pi*(2k+1) match the reference semantics.)
    """
    e = jnp.exp(-jnp.abs(zr))           # always in (0, 1]
    c = jnp.cos(zi)
    s = jnp.sin(zi)
    pos = zr >= 0.0
    dr = jnp.where(pos, 1.0 + e * c, e + c)
    di = jnp.where(pos, -e * s, -s)
    num = jnp.where(pos, 1.0, e)
    inv_den = num / (dr * dr + di * di)
    return dr * inv_den, -di * inv_den


def _squeeze_mlp(yr, yi, w1t, w1b, w2rt, w2it):
    """Packed complex MLP: ComplexLinear -> ComplexReLU -> ComplexLinear -> sigmoid."""
    hc = (jnp.dot(yr, w1t, preferred_element_type=jnp.float32)
          + jnp.dot(yi, w1b, preferred_element_type=jnp.float32))   # [Re(h) | Im(h)]
    hc = jnp.maximum(hc, 0.0)                                       # ComplexReLU
    zr = jnp.dot(hc, w2rt, preferred_element_type=jnp.float32)
    zi = jnp.dot(hc, w2it, preferred_element_type=jnp.float32)
    return _complex_sigmoid(zr, zi)


# --------------------------------------------------------------------------- #
# Fused single-pass kernel (whole tensor resident in VMEM).                    #
# --------------------------------------------------------------------------- #
def _make_fused_kernel(inv_true_s):
    def kernel(xr_ref, xi_ref, w1t_ref, w1b_ref, w2rt_ref, w2it_ref, or_ref, oi_ref):
        xr = xr_ref[...]                              # (B, C, S)
        xi = xi_ref[...]
        yr = jnp.sum(xr, axis=-1) * inv_true_s        # (B, C) ComplexAvgPool
        yi = jnp.sum(xi, axis=-1) * inv_true_s
        sr, si = _squeeze_mlp(yr, yi, w1t_ref[...], w1b_ref[...],
                              w2rt_ref[...], w2it_ref[...])
        sr = sr[:, :, None]
        si = si[:, :, None]
        or_ref[...] = xr * sr - xi * si               # complex multiply
        oi_ref[...] = xr * si + xi * sr
    return kernel


# --------------------------------------------------------------------------- #
# Pass 1: tiled spatial reduction + squeeze MLP + complex sigmoid.             #
# Grid = (B "parallel", S-tiles "arbitrary").                                  #
# --------------------------------------------------------------------------- #
def _make_squeeze_kernel(true_s, s_tile, ragged):
    inv_true_s = 1.0 / float(true_s)

    def kernel(xr_ref, xi_ref, w1t_ref, w1b_ref, w2rt_ref, w2it_ref,
               sr_ref, si_ref, acc_r, acc_i):
        k = pl.program_id(1)

        @pl.when(k == 0)
        def _init():
            acc_r[...] = jnp.zeros_like(acc_r)
            acc_i[...] = jnp.zeros_like(acc_i)

        xr = xr_ref[...]                              # (1, C, s_tile)
        xi = xi_ref[...]
        if ragged:
            # Ragged last tile: out-of-bounds lanes hold garbage -> mask before sum.
            rem = true_s - k * s_tile
            lane = jax.lax.broadcasted_iota(jnp.int32, xr.shape, 2)
            keep = lane < rem
            xr = jnp.where(keep, xr, 0.0)
            xi = jnp.where(keep, xi, 0.0)
        acc_r[...] += jnp.sum(xr, axis=-1)            # (1, C)
        acc_i[...] += jnp.sum(xi, axis=-1)

        # Output block index is constant across k (reduction axis): the buffer stays
        # resident and is written back exactly once, after this finalize.
        @pl.when(k == pl.num_programs(1) - 1)
        def _finalize():
            yr = acc_r[...] * inv_true_s              # divide by TRUE spatial count
            yi = acc_i[...] * inv_true_s
            sr, si = _squeeze_mlp(yr, yi, w1t_ref[...], w1b_ref[...],
                                  w2rt_ref[...], w2it_ref[...])
            sr_ref[...] = sr[:, :, None]              # (1, C, 1)
            si_ref[...] = si[:, :, None]

    return kernel


# --------------------------------------------------------------------------- #
# Pass 2: apply the (B, C, 1) complex scale to every spatial tile.             #
# Ragged last tile: OOB lanes compute garbage but their writes are clipped.    #
# --------------------------------------------------------------------------- #
def _scale_kernel(sr_ref, si_ref, xr_ref, xi_ref, or_ref, oi_ref):
    sr = sr_ref[...]                                  # (B, C, 1) -> lane broadcast
    si = si_ref[...]
    xr = xr_ref[...]                                  # (B, C, s_tile)
    xi = xi_ref[...]
    or_ref[...] = xr * sr - xi * si
    oi_ref[...] = xr * si + xi * sr


# --------------------------------------------------------------------------- #
# Wrapper                                                                      #
# --------------------------------------------------------------------------- #
def complex_se_layer(xr, xi, w1r, w1i, w2r, w2i, *, s_tile=None, force_two_pass=False):
    """xr, xi: (B, C, *spatial) float32.  w1*: (Hd, C), w2*: (C, Hd) torch-style."""
    sz = xr.shape
    B, C = int(sz[0]), int(sz[1])
    S = int(np.prod(sz[2:])) if len(sz) > 2 else 1
    Hd = int(w1r.shape[0])
    C8 = _round_up(C, 8)

    xr_f = jnp.asarray(xr, jnp.float32).reshape(B, C, S)
    xi_f = jnp.asarray(xi, jnp.float32).reshape(B, C, S)

    # Pack the complex-linear weights once (outside the kernels) so each
    # ComplexLinear is 2 real matmuls instead of 4:
    #   hc = [hr|hi] = yr @ w1t + yi @ w1b,  zr = hc @ w2rt,  zi = hc @ w2it
    w1t = jnp.concatenate([w1r.T, w1i.T], axis=1).astype(jnp.float32)     # (C, 2Hd)
    w1b = jnp.concatenate([-w1i.T, w1r.T], axis=1).astype(jnp.float32)    # (C, 2Hd)
    w2rt = jnp.concatenate([w2r.T, -w2i.T], axis=0).astype(jnp.float32)   # (2Hd, C)
    w2it = jnp.concatenate([w2i.T, w2r.T], axis=0).astype(jnp.float32)    # (2Hd, C)
    weights = (w1t, w1b, w2rt, w2it)

    # -------- generation-aware VMEM budgets (v7x 64 MiB vs v5e/v6e 128 MiB) --------
    cap = _vmem_capacity_bytes()
    vmem_limit = int(min(cap * 5 // 8, 96 << 20))     # ~40 MiB v7x, ~80 MiB v5e/v6e

    # Padded VMEM footprint of one full (B, C, S) f32 array + the tiny weights.
    arr_vmem = B * C8 * _round_up(S, 128) * 4
    w_vmem = 2 * (C8 * _round_up(2 * Hd, 128) + _round_up(2 * Hd, 8) * _round_up(C, 128)) * 4
    fused_bytes = 4 * arr_vmem + w_vmem + (2 << 20)

    # ---------------- fused single-pass path (x fits in VMEM) ----------------
    if (not force_two_pass) and fused_bytes <= int(cap * 0.45):
        vmem_specs = pl.BlockSpec(memory_space=pltpu.MemorySpace.VMEM)
        out_r, out_i = pl.pallas_call(
            _make_fused_kernel(1.0 / float(S)),
            out_shape=(jax.ShapeDtypeStruct((B, C, S), jnp.float32),
                       jax.ShapeDtypeStruct((B, C, S), jnp.float32)),
            in_specs=[vmem_specs] * 6,
            out_specs=(vmem_specs, vmem_specs),
            compiler_params=pltpu.CompilerParams(vmem_limit_bytes=vmem_limit),
            cost_estimate=pl.CostEstimate(
                flops=int(8 * B * C * S + 16 * B * C * Hd + 30 * B * C),
                transcendentals=int(3 * B * C),
                bytes_accessed=int(4 * B * C * S * 4 + 8 * C * Hd * 4)),
        )(xr_f, xi_f, *weights)
        return out_r.reshape(sz), out_i.reshape(sz)

    # ---------------- two-pass tiled path ----------------
    # Decoupled tile sizes: pass 1 keeps 4 resident tile buffers (2 inputs x 2 bufs,
    # per-B slices); pass 2 keeps 8 (2 in + 2 out, x2 bufs, full-B slices).
    budget = int(vmem_limit * 3 // 4)
    if s_tile is None:
        s_tile1 = budget // (16 * C8)
        s_tile2 = budget // (32 * B * C8)
    else:
        s_tile1 = s_tile2 = int(s_tile)
    s_cap = _round_up(S, 128)
    s_tile1 = int(min(max(128, (s_tile1 // 128) * 128), 8192, s_cap))
    s_tile2 = int(min(max(128, (s_tile2 // 128) * 128), 8192, s_cap))

    n1 = pl.cdiv(S, s_tile1)
    n2 = pl.cdiv(S, s_tile2)
    ragged1 = (S % s_tile1) != 0

    # ---------------- pass 1: reduction + squeeze + sigmoid ----------------
    x1_spec = pl.BlockSpec((1, C, s_tile1), lambda b, k: (b, 0, k))
    s_out_spec = pl.BlockSpec((1, C, 1), lambda b, k: (b, 0, 0))
    w_specs = [pl.BlockSpec((C, 2 * Hd), lambda b, k: (0, 0)),
               pl.BlockSpec((C, 2 * Hd), lambda b, k: (0, 0)),
               pl.BlockSpec((2 * Hd, C), lambda b, k: (0, 0)),
               pl.BlockSpec((2 * Hd, C), lambda b, k: (0, 0))]

    sr, si = pl.pallas_call(
        _make_squeeze_kernel(S, s_tile1, ragged1),
        out_shape=(jax.ShapeDtypeStruct((B, C, 1), jnp.float32),
                   jax.ShapeDtypeStruct((B, C, 1), jnp.float32)),
        grid=(B, n1),
        in_specs=[x1_spec, x1_spec] + w_specs,
        out_specs=(s_out_spec, s_out_spec),
        scratch_shapes=[pltpu.VMEM((1, C), jnp.float32),
                        pltpu.VMEM((1, C), jnp.float32)],
        compiler_params=pltpu.CompilerParams(
            dimension_semantics=("parallel", "arbitrary"),
            vmem_limit_bytes=vmem_limit),
        cost_estimate=pl.CostEstimate(
            flops=int(2 * B * C * S + 16 * B * C * Hd + 30 * B * C),
            transcendentals=int(3 * B * C),
            bytes_accessed=int(2 * B * C * S * 4 + 8 * C * Hd * 4 + 2 * B * C * 4)),
    )(xr_f, xi_f, *weights)

    # ---------------- pass 2: tiled scale-apply (HBM-bound) ----------------
    x2_spec = pl.BlockSpec((B, C, s_tile2), lambda k: (0, 0, k))
    s_in_spec = pl.BlockSpec((B, C, 1), lambda k: (0, 0, 0))

    out_r, out_i = pl.pallas_call(
        _scale_kernel,
        out_shape=(jax.ShapeDtypeStruct((B, C, S), jnp.float32),
                   jax.ShapeDtypeStruct((B, C, S), jnp.float32)),
        grid=(n2,),
        in_specs=[s_in_spec, s_in_spec, x2_spec, x2_spec],
        out_specs=(x2_spec, x2_spec),
        compiler_params=pltpu.CompilerParams(
            dimension_semantics=("parallel",),
            vmem_limit_bytes=vmem_limit),
        cost_estimate=pl.CostEstimate(
            flops=int(6 * B * C * S),
            transcendentals=0,
            bytes_accessed=int(4 * B * C * S * 4 + 2 * B * C * 4)),
    )(sr, si, xr_f, xi_f)

    return out_r.reshape(sz), out_i.reshape(sz)


# --------------------------------------------------------------------------- #
# float64 numpy reference (same math as the PyTorch module)                    #
# --------------------------------------------------------------------------- #
def _reference_numpy(xr, xi, w1r, w1i, w2r, w2i):
    x = np.asarray(xr, np.float64) + 1j * np.asarray(xi, np.float64)
    w1 = np.asarray(w1r, np.float64) + 1j * np.asarray(w1i, np.float64)
    w2 = np.asarray(w2r, np.float64) + 1j * np.asarray(w2i, np.float64)
    sz = x.shape
    y = x.reshape(sz[0], sz[1], -1).mean(axis=-1)                  # ComplexAvgPool
    h = y @ w1.T                                                   # ComplexLinear #1
    h = np.maximum(h.real, 0.0) + 1j * np.maximum(h.imag, 0.0)     # ComplexReLU
    z = h @ w2.T                                                   # ComplexLinear #2
    s = 1.0 / (1.0 + np.exp(-z))                                   # complex sigmoid
    bshape = (sz[0], sz[1]) + (1,) * (len(sz) - 2)
    out = x * s.reshape(bshape)
    return out.real, out.imag


if __name__ == "__main__":
    # S = 15*17 = 255 is NOT a multiple of 128 -> exercises the in-kernel ragged-tile
    # handling (iota mask in pass 1, clipped boundary writes in pass 2), without any
    # jnp.pad / slice HBM round-trips.
    B, C, H, W = 2, 32, 15, 17
    reduction = 16
    Hd = C // reduction + 1     # 3

    key = jax.random.PRNGKey(0)
    k = jax.random.split(key, 6)
    xr = jax.random.normal(k[0], (B, C, H, W), dtype=jnp.float32)
    xi = jax.random.normal(k[1], (B, C, H, W), dtype=jnp.float32)
    # deterministic weight init (nn.Linear-like scale 1/sqrt(fan_in))
    w1r = jax.random.normal(k[2], (Hd, C), dtype=jnp.float32) / jnp.sqrt(float(C))
    w1i = jax.random.normal(k[3], (Hd, C), dtype=jnp.float32) / jnp.sqrt(float(C))
    w2r = jax.random.normal(k[4], (C, Hd), dtype=jnp.float32) / jnp.sqrt(float(Hd))
    w2i = jax.random.normal(k[5], (C, Hd), dtype=jnp.float32) / jnp.sqrt(float(Hd))

    ref_r, ref_i = _reference_numpy(np.asarray(xr), np.asarray(xi),
                                    np.asarray(w1r), np.asarray(w1i),
                                    np.asarray(w2r), np.asarray(w2i))

    # 1) fused single-pass path (whole tensor fits in VMEM at this size)
    out_r, out_i = complex_se_layer(xr, xi, w1r, w1i, w2r, w2i)
    jax.block_until_ready((out_r, out_i))
    np.testing.assert_allclose(np.asarray(out_r), ref_r, rtol=1e-4, atol=1e-4)
    np.testing.assert_allclose(np.asarray(out_i), ref_i, rtol=1e-4, atol=1e-4)

    # 2) two-pass tiled path with a forced s_tile=128 -> ragged last tile + multi-step
    #    reduction (init / accumulate / finalize) + parallel-B pass-1 grid.
    out_r2, out_i2 = complex_se_layer(xr, xi, w1r, w1i, w2r, w2i,
                                      s_tile=128, force_two_pass=True)
    jax.block_until_ready((out_r2, out_i2))
    np.testing.assert_allclose(np.asarray(out_r2), ref_r, rtol=1e-4, atol=1e-4)
    np.testing.assert_allclose(np.asarray(out_i2), ref_i, rtol=1e-4, atol=1e-4)

    print("KERNEL_OK")
</pallas_src>

<mosaic_0001>
module attributes {stable_mosaic.version = 11 : i64} {
  func.func @kernel(%arg0: memref<2x32x255xf32, #tpu.memory_space<vmem>>, %arg1: memref<2x32x255xf32, #tpu.memory_space<vmem>>, %arg2: memref<32x6xf32, #tpu.memory_space<vmem>>, %arg3: memref<32x6xf32, #tpu.memory_space<vmem>>, %arg4: memref<6x32xf32, #tpu.memory_space<vmem>>, %arg5: memref<6x32xf32, #tpu.memory_space<vmem>>, %arg6: memref<2x32x255xf32, #tpu.memory_space<vmem>>, %arg7: memref<2x32x255xf32, #tpu.memory_space<vmem>>) attributes {dimension_semantics = [], scalar_prefetch = 0 : i64, scratch_operands = 0 : i64, tpu.core_type = #tpu.core_type<tc>} {
    %c0 = arith.constant 0 : index
    %c0_0 = arith.constant 0 : index
    %c0_1 = arith.constant 0 : index
    %0 = vector.load %arg0[%c0, %c0_0, %c0_1] : memref<2x32x255xf32, #tpu.memory_space<vmem>>, vector<2x32x255xf32>
    %c0_2 = arith.constant 0 : index
    %c0_3 = arith.constant 0 : index
    %c0_4 = arith.constant 0 : index
    %1 = vector.load %arg1[%c0_2, %c0_3, %c0_4] : memref<2x32x255xf32, #tpu.memory_space<vmem>>, vector<2x32x255xf32>
    %cst = arith.constant dense<0.000000e+00> : vector<2x32xf32>
    %2 = vector.multi_reduction <add>, %0, %cst [2] : vector<2x32x255xf32> to vector<2x32xf32>
    %cst_5 = arith.constant 0.00392156886 : f32
    %3 = vector.broadcast %cst_5 : f32 to vector<2x32xf32>
    %4 = arith.mulf %2, %3 : vector<2x32xf32>
    %cst_6 = arith.constant dense<0.000000e+00> : vector<2x32xf32>
    %5 = vector.multi_reduction <add>, %1, %cst_6 [2] : vector<2x32x255xf32> to vector<2x32xf32>
    %cst_7 = arith.constant 0.00392156886 : f32
    %6 = vector.broadcast %cst_7 : f32 to vector<2x32xf32>
    %7 = arith.mulf %5, %6 : vector<2x32xf32>
    %c0_8 = arith.constant 0 : index
    %c0_9 = arith.constant 0 : index
    %8 = vector.load %arg2[%c0_8, %c0_9] : memref<32x6xf32, #tpu.memory_space<vmem>>, vector<32x6xf32>
    %c0_10 = arith.constant 0 : index
    %c0_11 = arith.constant 0 : index
    %9 = vector.load %arg3[%c0_10, %c0_11] : memref<32x6xf32, #tpu.memory_space<vmem>>, vector<32x6xf32>
    %c0_12 = arith.constant 0 : index
    %c0_13 = arith.constant 0 : index
    %10 = vector.load %arg4[%c0_12, %c0_13] : memref<6x32xf32, #tpu.memory_space<vmem>>, vector<6x32xf32>
    %c0_14 = arith.constant 0 : index
    %c0_15 = arith.constant 0 : index
    %11 = vector.load %arg5[%c0_14, %c0_15] : memref<6x32xf32, #tpu.memory_space<vmem>>, vector<6x32xf32>
    %cst_16 = arith.constant dense<0.000000e+00> : vector<2x6xf32>
    %12 = tpu.matmul %4, %8, %cst_16 {dimension_numbers = #tpu.dot_dimension_numbers<[1], [0], [0], [1], [0, 0, 1, 1], [], []>} : vector<2x32xf32>, vector<32x6xf32>, vector<2x6xf32> -> vector<2x6xf32>
    %cst_17 = arith.constant dense<0.000000e+00> : vector<2x6xf32>
    %13 = tpu.matmul %7, %9, %cst_17 {dimension_numbers = #tpu.dot_dimension_numbers<[1], [0], [0], [1], [0, 0, 1, 1], [], []>} : vector<2x32xf32>, vector<32x6xf32>, vector<2x6xf32> -> vector<2x6xf32>
    %14 = arith.addf %12, %13 : vector<2x6xf32>
    %cst_18 = arith.constant 0.000000e+00 : f32
    %15 = vector.broadcast %cst_18 : f32 to vector<2x6xf32>
    %16 = arith.maximumf %14, %15 : vector<2x6xf32>
    %cst_19 = arith.constant dense<0.000000e+00> : vector<2x32xf32>
    %17 = tpu.matmul %16, %10, %cst_19 {dimension_numbers = #tpu.dot_dimension_numbers<[1], [0], [0], [1], [0, 0, 1, 1], [], []>} : vector<2x6xf32>, vector<6x32xf32>, vector<2x32xf32> -> vector<2x32xf32>
    %cst_20 = arith.constant dense<0.000000e+00> : vector<2x32xf32>
    %18 = tpu.matmul %16, %11, %cst_20 {dimension_numbers = #tpu.dot_dimension_numbers<[1], [0], [0], [1], [0, 0, 1, 1], [], []>} : vector<2x6xf32>, vector<6x32xf32>, vector<2x32xf32> -> vector<2x32xf32>
    %19 = math.absf %17 : vector<2x32xf32>
    %cst_21 = arith.constant 0.000000e+00 : f32
    %20 = vector.broadcast %cst_21 : f32 to vector<2x32xf32>
    %21 = arith.subf %20, %19 : vector<2x32xf32>
    %22 = math.exp %21 : vector<2x32xf32>
    %23 = math.cos %18 : vector<2x32xf32>
    %24 = math.sin %18 : vector<2x32xf32>
    %cst_22 = arith.constant 0.000000e+00 : f32
    %25 = vector.broadcast %cst_22 : f32 to vector<2x32xf32>
    %26 = arith.cmpf oge, %17, %25 : vector<2x32xf32>
    %27 = arith.mulf %22, %23 : vector<2x32xf32>
    %cst_23 = arith.constant 1.000000e+00 : f32
    %28 = vector.broadcast %cst_23 : f32 to vector<2x32xf32>
    %29 = arith.addf %28, %27 : vector<2x32xf32>
    %30 = arith.addf %22, %23 : vector<2x32xf32>
    %31 = arith.select %26, %29, %30 : vector<2x32xi1>, vector<2x32xf32>
    %cst_24 = arith.constant 0.000000e+00 : f32
    %32 = vector.broadcast %cst_24 : f32 to vector<2x32xf32>
    %33 = arith.subf %32, %22 : vector<2x32xf32>
    %34 = arith.mulf %33, %24 : vector<2x32xf32>
    %cst_25 = arith.constant 0.000000e+00 : f32
    %35 = vector.broadcast %cst_25 : f32 to vector<2x32xf32>
    %36 = arith.subf %35, %24 : vector<2x32xf32>
    %37 = arith.select %26, %34, %36 : vector<2x32xi1>, vector<2x32xf32>
    %cst_26 = arith.constant 1.000000e+00 : f32
    %38 = vector.broadcast %cst_26 : f32 to vector<2x32xf32>
    %39 = arith.select %26, %38, %22 : vector<2x32xi1>, vector<2x32xf32>
    %40 = arith.mulf %31, %31 : vector<2x32xf32>
    %41 = arith.mulf %37, %37 : vector<2x32xf32>
    %42 = arith.addf %40, %41 : vector<2x32xf32>
    %43 = arith.divf %39, %42 : vector<2x32xf32>
    %44 = arith.mulf %31, %43 : vector<2x32xf32>
    %cst_27 = arith.constant 0.000000e+00 : f32
    %45 = vector.broadcast %cst_27 : f32 to vector<2x32xf32>
    %46 = arith.subf %45, %37 : vector<2x32xf32>
    %47 = arith.mulf %46, %43 : vector<2x32xf32>
    %48 = vector.shape_cast %44 : vector<2x32xf32> to vector<2x32x1xf32>
    %49 = vector.shape_cast %47 : vector<2x32xf32> to vector<2x32x1xf32>
    %50 = vector.broadcast %48 : vector<2x32x1xf32> to vector<2x32x255xf32>
    %51 = arith.mulf %0, %50 : vector<2x32x255xf32>
    %52 = vector.broadcast %49 : vector<2x32x1xf32> to vector<2x32x255xf32>
    %53 = arith.mulf %1, %52 : vector<2x32x255xf32>
    %54 = arith.subf %51, %53 : vector<2x32x255xf32>
    %c0_28 = arith.constant 0 : index
    %c0_29 = arith.constant 0 : index
    %c0_30 = arith.constant 0 : index
    %55 = vector.load %arg6[%c0_28, %c0_29, %c0_30] : memref<2x32x255xf32, #tpu.memory_space<vmem>>, vector<2x32x255xf32>
    tpu.vector_store %arg6[%c0_28, %c0_29, %c0_30], %54 {strides = array<i32>} : memref<2x32x255xf32, #tpu.memory_space<vmem>>, vector<2x32x255xf32>,
    %56 = vector.broadcast %49 : vector<2x32x1xf32> to vector<2x32x255xf32>
    %57 = arith.mulf %0, %56 : vector<2x32x255xf32>
    %58 = vector.broadcast %48 : vector<2x32x1xf32> to vector<2x32x255xf32>
    %59 = arith.mulf %1, %58 : vector<2x32x255xf32>
    %60 = arith.addf %57, %59 : vector<2x32x255xf32>
    %c0_31 = arith.constant 0 : index
    %c0_32 = arith.constant 0 : index
    %c0_33 = arith.constant 0 : index
    %61 = vector.load %arg7[%c0_31, %c0_32, %c0_33] : memref<2x32x255xf32, #tpu.memory_space<vmem>>, vector<2x32x255xf32>
    tpu.vector_store %arg7[%c0_31, %c0_32, %c0_33], %60 {strides = array<i32>} : memref<2x32x255xf32, #tpu.memory_space<vmem>>, vector<2x32x255xf32>,
    return
  }
}

</mosaic_0001>

<bundles_post_ra>
// kernel: tpu_custom_call.1
= control target key start
LH: loop header
LB: loop body
LE: loop exit
PB: predicated region body
PF: predicated region fallthrough
CT: control target
= control target key end

     0   :  { %13 = vsyncpa [#allocation3], 0  ;;  %s1733_s0 = inlined_call_operand.hbm [shape: f32[2,32,255], index: 0, kind: input, shape index: {}]   ;;  %s1734_s1 = inlined_call_operand.hbm [shape: f32[2,32,255], index: 1, kind: input, shape index: {}]   ;;  %s1735_s2 = inlined_call_operand.vmem [shape: f32[32,6], index: 2, kind: input, shape index: {}]   ;;  %s1736_s3 = inlined_call_operand.vmem [shape: f32[32,6], index: 3, kind: input, shape index: {}]   ;;  %s1737_s4 = inlined_call_operand.vmem [shape: f32[6,32], index: 4, kind: input, shape index: {}]   ;;  %s1738_s5 = inlined_call_operand.vmem [shape: f32[6,32], index: 5, kind: input, shape index: {}]   ;;  %s1739_s6 = inlined_call_operand.hbm [shape: f32[2,32,255], index: 6, kind: output, shape index: {0}]   ;;  %s1740_s7 = inlined_call_operand.hbm [shape: f32[2,32,255], index: 7, kind: output, shape index: {1}]  }
   0x1   :  { %14 = vsyncpa [#allocation6], 0 }
   0x2   :  { %15 = vsyncpa [#allocation4], 0 }
   0x3   :  { %16 = vsyncpa [#allocation9], 0  ;;  %s1242_s24 = smov [#allocation2]   ;;  %s1146_s28 = scalar_lea.hbm %s1733_s0, 2048 }
   0x4   :  { %s22_s25 = sshll.u32 %s1242_s24, 4  ;;  %p1147_p0 = scmp.ne.s32.totalorder %s1733_s0, %s1146_s28  ;;  %s23_s25 = int_to_ptr.vmem [resolvable:$true] %s22_s25 }
   0x5   :  { %p1150_p1 = scmp.lt.u32.totalorder %s1146_s28, %s1733_s0 }
   0x7   :  { %p1152_p2 = pnand %p1150_p1, %p1147_p0 }
   0x9   :  { %1155 = shalt.err (!%p1152_p2)
}
   0xa   :  { %s1156_s10 = scalar_lea.vmem %s23_s25, 2048  ;;  %p1161_p4 = scmp.lt.s32.totalorder %s23_s25, %s23_s25 }
   0xb   :  { %p1157_p3 = scmp.ne.s32.totalorder %s23_s25, %s1156_s10  ;;  %p1162_p5 = scmp.lt.s32.totalorder %s1156_s10, %s1156_s10 }
   0xd   :  { %p1163_p6 = por %p1162_p5, %p1161_p4 }
   0xf   :  { %p1164_p7 = pnand %p1163_p6, %p1157_p3 }
  0x11   :  { %1167 = shalt.err (!%p1164_p7)
}
  0x12   :  { %s1243_s11 = smov 256   ;;  %s1244_s12 = smov 16  }
  0x13   :  { %28 = dma.hbm_to_vmem [thread:$0]  %s1733_s0, 2048, %s23_s25, [#allocation3], %s1243_s11, %s1243_s11, %s1244_s12  }
  0x14   :  { %s1245_s15 = smov [#allocation5]   ;;  %s1168_s19 = scalar_lea.hbm %s1734_s1, 2048 }
  0x15   :  { %s34_s16 = sshll.u32 %s1245_s15, 4  ;;  %p1169_p8 = scmp.ne.s32.totalorder %s1734_s1, %s1168_s19  ;;  %s35_s16 = int_to_ptr.vmem [resolvable:$true] %s34_s16 }
  0x16   :  { %p1172_p9 = scmp.lt.u32.totalorder %s1168_s19, %s1734_s1 }
  0x18   :  { %p1174_p10 = pnand %p1172_p9, %p1169_p8 }
  0x1a   :  { %1177 = shalt.err (!%p1174_p10)
}
  0x1b   :  { %s1178_s24 = scalar_lea.vmem %s35_s16, 2048  ;;  %p1183_p12 = scmp.lt.s32.totalorder %s35_s16, %s35_s16 }
  0x1c   :  { %p1179_p11 = scmp.ne.s32.totalorder %s35_s16, %s1178_s24  ;;  %p1184_p13 = scmp.lt.s32.totalorder %s1178_s24, %s1178_s24 }
  0x1e   :  { %p1185_p0 = por %p1184_p13, %p1183_p12 }
  0x20   :  { %p1186_p1 = pnand %p1185_p0, %p1179_p11 }
  0x22   :  { %1189 = shalt.err (!%p1186_p1)
}
  0x23   :  { %40 = dma.hbm_to_vmem [thread:$0]  %s1734_s1, 2048, %s35_s16, [#allocation6], %s1243_s11, %s1243_s11, %s1244_s12  }
  0x24   :  { %1234 = dma.done.wait [#allocation3], 2048  }
  0x25   :  { %1235 = vsyncadd [#allocation3], 4294965248 }
  0x26   :  { %1236 = dma.done.wait [#allocation6], 2048  }
  0x27   :  { %1237 = vsyncadd [#allocation6], 4294965248  ;;  %vm87_vm0 = vcmask 1039360   ;;  %v1327_v0 = vld [vmem:[#allocation5 + $0x40] sm:$0xff]  ;;  %v1329_v1 = vld [vmem:[#allocation5 + $0x48] sm:$0xff]  ;;  %vm1247_vm1 = vmmov 0  }
  0x28   :  { %v1331_v2 = vld [vmem:[#allocation5] sm:$0xff]  ;;  %v144_v3 = vsel %vm87_vm0, %v1329_v1, 0.0  ;;  %v1335_v4 = vld [vmem:[#allocation5 + $0x8] sm:$0xff]  ;;  %v1337_v5 = vld [vmem:[#allocation5 + $0x50] sm:$0xff]  ;;  %vm197_vm2 = vcmask 130112   ;;  %vm204_vm3 = vcmask 195712  }
  0x29   :  { %v1339_v6 = vld [vmem:[#allocation5 + $0x58] sm:$0xff]  ;;  %v145_v7 = vadd.f32 %v144_v3, %v1327_v0  ;;  %v128_v8 = vsel %vm87_vm0, %v1335_v4, 0.0  ;;  %v1346_v10 = vld [vmem:[#allocation5 + $0x10] sm:$0xff]  ;;  %v1353_v14 = vld [vmem:[#allocation5 + $0x68] sm:$0xff]  ;;  %vm211_vm4 = vcmask 261312   ;;  %vm232_vm5 = vcmask 1041409  }
  0x2a   :  { %v148_v9 = vsel %vm87_vm0, %v1339_v6, 0.0  ;;  %v1348_v11 = vld [vmem:[#allocation5 + $0x18] sm:$0xff]  ;;  %v129_v12 = vadd.f32 %v128_v8, %v1331_v2  ;;  %v1355_v15 = vld [vmem:[#allocation5 + $0x28] sm:$0xff]  ;;  %v1359_v18 = vld [vmem:[#allocation5 + $0x60] sm:$0xff]  ;;  %v152_v19 = vsel %vm87_vm0, %v1353_v14, 0.0  ;;  %vm234_vm6 = vcmask 261120  }
  0x2b   :  { %v132_v13 = vsel %vm87_vm0, %v1348_v11, 0.0  ;;  %146 = vadd.xlane.f32.xlu1 %v145_v7  ;;  %v149_v16 = vadd.f32 %v148_v9, %v1337_v5  ;;  %v1363_v20 = vld [vmem:[#allocation5 + $0x20] sm:$0xff]  ;;  %v136_v21 = vsel %vm87_vm0, %v1355_v15, 0.0  ;;  %v1367_v22 = vld [vmem:[#allocation5 + $0x78] sm:$0xff]  ;;  %v153_v24 = vadd.f32 %v152_v19, %v1359_v18  ;;  %v1373_v26 = vld [vmem:[#allocation5 + $0x70] sm:$0xff]  ;;  %s1256_s22 = smov [#allocation8]  }
  0x2c   :  { %130 = vadd.xlane.f32.xlu0 %v129_v12  ;;  %v133_v17 = vadd.f32 %v132_v13, %v1346_v10  ;;  %1744 = vst [vmem:[#allocation14_spill] sm:$0xff] %v1367_v22  ;;  %v1369_v23 = vld [vmem:[#allocation5 + $0x38] sm:$0xff]  ;;  %v137_v25 = vadd.f32 %v136_v21, %v1363_v20  ;;  %v156_v27 = vsel %vm87_vm0, %v1367_v22, 0.0  ;;  %v1377_v28 = vld [vmem:[#allocation5 + $0x30] sm:$0xff]  ;;  %v1383_v31 = vld [vmem:[#allocation2 + $0x8] sm:$0xff]  ;;  %v1246_v9 = vmov 0.0|0.0  }
  0x2d   :  { %v140_v29 = vsel %vm87_vm0, %v1369_v23, 0.0  ;;  %v1381_v30 = vld [vmem:[#allocation2 + $0x18] sm:$0xff]  ;;  %v157_v32 = vadd.f32 %v156_v27, %v1373_v26  ;;  %v1387_v34 = vld [vmem:[#allocation2 + $0x10] sm:$0xff]  ;;  %v1391_v36 = vld [vmem:[#allocation2] sm:$0xff]  ;;  %v88_v37 = vsel %vm87_vm0, %v1383_v31, 0.0  ;;  %1105 = vmatprep.subr.bf16.mxu0 %v1246_v9  ;;  %v186_v19 = vlaneseq  ;;  %s1028_s23 = sshll.u32 %s1256_s22, 4  ;;  %s1694_s23 = int_to_ptr.vmem [resolvable:$true] %s1028_s23 }
  0x2e   :  { %v141_v33 = vadd.f32 %v140_v29, %v1377_v28  ;;  %v92_v35 = vsel %vm87_vm0, %v1381_v30, 0.0  ;;  %v1395_v38 = vld [vmem:[#allocation2 + $0x58] sm:$0xff]  ;;  %v1397_v39 = vld [vmem:[#allocation2 + $0x48] sm:$0xff]  ;;  %v89_v41 = vadd.f32 %v88_v37, %v1391_v36  ;;  %v1401_v42 = vld [vmem:[#allocation2 + $0x50] sm:$0xff]  ;;  %vm431_vm7 = vcmask 1045504  }
  0x2f   :  { %150 = vadd.xlane.f32.xlu1 %v149_v16  ;;  %v93_v40 = vadd.f32 %v92_v35, %v1387_v34  ;;  %v108_v43 = vsel %vm87_vm0, %v1395_v38, 0.0  ;;  %v1405_v44 = vld [vmem:[#allocation2 + $0x40] sm:$0xff]  ;;  %v104_v45 = vsel %vm87_vm0, %v1397_v39, 0.0  ;;  %v1409_v46 = vld [vmem:[#allocation2 + $0x68] sm:$0xff]  ;;  %v1423_v54 = vld [vmem:[#allocation2 + $0x78] sm:$0xff]  ;;  %vm427_vm8 = vcmask 48128  }
  0x30   :  { %134 = vadd.xlane.f32.xlu0 %v133_v17  ;;  %v1411_v47 = vld [vmem:[#allocation2 + $0x28] sm:$0xff]  ;;  %v109_v48 = vadd.f32 %v108_v43, %v1401_v42  ;;  %v105_v49 = vadd.f32 %v104_v45, %v1405_v44  ;;  %v1415_v50 = vld [vmem:[#allocation2 + $0x60] sm:$0xff]  ;;  %v112_v51 = vsel %vm87_vm0, %v1409_v46, 0.0  ;;  %v1425_v55 = vld [vmem:[#allocation2 + $0x38] sm:$0xff]  ;;  %v116_v59 = vsel %vm87_vm0, %v1423_v54, 0.0 }
  0x31   :  { %v1419_v52 = vld [vmem:[#allocation2 + $0x20] sm:$0xff]  ;;  %v96_v53 = vsel %vm87_vm0, %v1411_v47, 0.0  ;;  %v113_v56 = vadd.f32 %v112_v51, %v1415_v50  ;;  %v1429_v58 = vld [vmem:[#allocation2 + $0x70] sm:$0xff]  ;;  %v100_v61 = vsel %vm87_vm0, %v1425_v55, 0.0  ;;  %v173_v63 = vld [vmem:[%s1736_s3 + $0x8] sm:$0xff]  ;;  %v1248_v17 = vmov 0.0  }
  0x32   :  { %v97_v57 = vadd.f32 %v96_v53, %v1419_v52  ;;  %v1433_v60 = vld [vmem:[#allocation2 + $0x30] sm:$0xff]  ;;  %v172_v62 = vld [vmem:[%s1736_s3] sm:$0xff]  ;;  %v117_v3 = vadd.f32 %v116_v59, %v1429_v58  ;;  %v175_v13 = vld [vmem:[%s1736_s3 + $0x18] sm:$0xff]  ;;  %1081 = vmatprep.mubr.msk.f32.mxu0 %vm1247_vm1, %v1248_v17  ;;  %1095 = vmatprep.subr.mxu1 %v1248_v17 }
  0x33   :  { %154 = vadd.xlane.f32.xlu1 %v153_v24  ;;  %v1106_v7 = vpack.c.bf16 %v173_v63, %v172_v62  ;;  %v101_v8 = vadd.f32 %v100_v61, %v1433_v60  ;;  %v174_v12 = vld [vmem:[%s1736_s3 + $0x10] sm:$0xff]  ;;  %1097 = vmatprep.mubr.msk.f32.mxu1 %vm1247_vm1, %v1248_v17  ;;  %v187_v24 = vand.u32 127, %v186_v19 }
  0x34   :  { %138 = vadd.xlane.f32.xlu0 %v137_v25  ;;  %v1109_v16 = vpack.c.bf16 %v175_v13, %v174_v12 }
  0x35   :  { %1107 = vmatpush3.bf16.msra.mxu0 %v1106_v7  ;;  %v192_v27 = vadd.s32 4294967288, %v187_v24 }
  0x36   :  { %1108 = vmatprep.subr.bf16.mxu0 %v1246_v9 }
  0x37   :  { %158 = vadd.xlane.f32.xlu1 %v157_v32  ;;  %v199_v32 = vadd.s32 4294967280, %v187_v24 }
  0x38   :  { %142 = vadd.xlane.f32.xlu0 %v141_v33  ;;  %v1459_v33 = vshrl.u32 %v186_v19, 7 }
  0x39   :  { %1110 = vmatpush3.bf16.msra.mxu0 %v1109_v16 }
  0x3a   :  { %1111 = vmatprep.subr.bf16.mxu0 %v1246_v9  ;;  %v1462_v37 = vsub.s32 %v192_v27, %v1459_v33  ;;  %v1465_v45 = vsub.s32 %v199_v32, %v1459_v33 }
  0x3b   :  { %94 = vadd.xlane.f32.xlu1 %v93_v40 }
  0x3c   :  { %90 = vadd.xlane.f32.xlu0 %v89_v41  ;;  %v206_v41 = vadd.s32 4294967272, %v187_v24 }
  0x3e   :  { %v1472_v62 = vsub.s32 %v206_v41, %v1459_v33 }
  0x3f   :  { %110 = vadd.xlane.f32.xlu1 %v109_v48 }
  0x40   :  { %106 = vadd.xlane.f32.xlu0 %v105_v49  ;;  %v1468_v49 = vsub.s32 %v187_v24, %v1459_v33  ;;  %v168_v24 = vld [vmem:[%s1735_s2] sm:$0xff] }
  0x43   :  { %114 = vadd.xlane.f32.xlu1 %v113_v56 }
  0x44   :  { %98 = vadd.xlane.f32.xlu0 %v97_v57 }
  0x47   :  { %118 = vadd.xlane.f32.xlu1 %v117_v3 }
  0x48   :  { %102 = vadd.xlane.f32.xlu0 %v101_v8 }
  0xb8   :  { %v147_v21 = vpop.xlane.xlu1 %146 }
  0xb9   :  { %v131_v25 = vpop.xlane.xlu0 %130  ;;  %v164_v51 = vmul.f32 0.003921569, %v147_v21 }
  0xba   :  { %v160_v57 = vmul.f32 0.003921569, %v131_v25  ;;  %v169_v25 = vld [vmem:[%s1735_s2 + $0x8] sm:$0xff] }
  0xbb   :  { %v216_v8 = vrot.slane %v164_v51, %v1468_v49 }
  0xbc   :  { %v151_v29 = vpop.xlane.xlu1 %150  ;;  %v191_v19 = vrot.slane %v160_v57, %v1468_v49  ;;  %v170_v57 = vld [vmem:[%s1735_s2 + $0x10] sm:$0xff] }
  0xbd   :  { %v135_v35 = vpop.xlane.xlu0 %134  ;;  %v165_v40 = vmul.f32 0.003921569, %v151_v29 }
  0xbe   :  { %v161_v43 = vmul.f32 0.003921569, %v135_v35 }
  0xbf   :  { %v220_v61 = vrot.slane %v165_v40, %v1462_v37 }
  0xc0   :  { %v155_v48 = vpop.xlane.xlu1 %154  ;;  %v196_v63 = vrot.slane %v161_v43, %v1462_v37 }
  0xc1   :  { %v166_v53 = vmul.f32 0.003921569, %v155_v48  ;;  %v139_v56 = vpop.xlane.xlu0 %138  ;;  %v221_v27 = vsel %vm197_vm2, %v220_v61, %v216_v8 }
  0xc2   :  { %v162_v59 = vmul.f32 0.003921569, %v139_v56  ;;  %v198_v32 = vsel %vm197_vm2, %v196_v63, %v191_v19 }
  0xc3   :  { %v225_v3 = vrot.slane %v166_v53, %v1465_v45  ;;  %v1112_v53 = vpack.c.bf16 %v169_v25, %v168_v24 }
  0xc4   :  { %v159_v7 = vpop.xlane.xlu1 %158  ;;  %v203_v12 = vrot.slane %v162_v59, %v1465_v45  ;;  %v171_v59 = vld [vmem:[%s1735_s2 + $0x18] sm:$0xff] }
  0xc5   :  { %v167_v13 = vmul.f32 0.003921569, %v159_v7  ;;  %v143_v16 = vpop.xlane.xlu0 %142  ;;  %v226_v35 = vsel %vm204_vm3, %v225_v3, %v221_v27  ;;  %v1115_v7 = vpack.c.bf16 %v171_v59, %v170_v57 }
  0xc6   :  { %v163_v21 = vmul.f32 0.003921569, %v143_v16  ;;  %v205_v43 = vsel %vm204_vm3, %v203_v12, %v198_v32 }
  0xc7   :  { %v230_v29 = vrot.slane %v167_v13, %v1472_v62 }
  0xc8   :  { %v210_v40 = vrot.slane %v163_v21, %v1472_v62  ;;  %v95_v41 = vpop.xlane.xlu1 %94 }
  0xc9   :  { %v91_v48 = vpop.xlane.xlu0 %90  ;;  %v231_v51 = vsel %vm211_vm4, %v230_v29, %v226_v35  ;;  %v121_v13 = vmul.f32 0.003921569, %v95_v41 }
  0xca   :  { %v212_v56 = vsel %vm211_vm4, %v210_v40, %v205_v43  ;;  %v120_v16 = vmul.f32 0.003921569, %v91_v48 }
  0xcb   :  { %v233_v61 = vsel %vm232_vm5, %v231_v51, %v212_v56  ;;  %v322_v32 = vrot.slane %v121_v13, %v1462_v37 }
  0xcc   :  { %1082 = vmatmul.mubr.msk.f32.vlgmr.msra.gmra.mrb[0].mxu0 %vm234_vm6, %v233_v61  ;;  %v111_v63 = vpop.xlane.xlu1 %110  ;;  %v318_v35 = vrot.slane %v120_v16, %v1468_v49 }
  0xcd   :  { %v107_v3 = vpop.xlane.xlu0 %106  ;;  %1113 = vmatpush3.bf16.msra.mxu0 %v1112_v53  ;;  %1092 = vmatprep.mubr.msk.f32.mxu0 %vm1247_vm1, %v1248_v17  ;;  %v125_v8 = vmul.f32 0.003921569, %v111_v63 }
  0xce   :  { %1114 = vmatprep.subr.bf16.mxu0 %v1246_v9  ;;  %v124_v12 = vmul.f32 0.003921569, %v107_v3  ;;  %v323_v57 = vsel %vm197_vm2, %v322_v32, %v318_v35  ;;  %v176_v3 = vld [vmem:[%s1737_s4] sm:$0x3f]  ;;  %s1255_s4 = smov [#allocation7]  }
  0xcf   :  { %v341_v27 = vrot.slane %v125_v8, %v1462_v37  ;;  %1096 = vmatpush3.msk.msra.mxu1 %vm431_vm7, %v176_v3 }
  0xd0   :  { %v115_v19 = vpop.xlane.xlu1 %114  ;;  %v337_v29 = vrot.slane %v124_v12, %v1468_v49  ;;  %1100 = vmatprep.subr.mxu1 %v1248_v17  ;;  %v177_v12 = vld [vmem:[%s1738_s5] sm:$0x3f]  ;;  %s1016_s5 = sshll.u32 %s1255_s4, 4  ;;  %s1017_s5 = int_to_ptr.vmem [resolvable:$true] %s1016_s5 }
  0xd1   :  { %v126_v21 = vmul.f32 0.003921569, %v115_v19  ;;  %v99_v24 = vpop.xlane.xlu0 %98  ;;  %1116 = vmatpush3.bf16.msra.mxu0 %v1115_v7  ;;  %s1190_s24 = scalar_lea.vmem %s1017_s5, 2048  ;;  %p1195_p3 = scmp.lt.s32.totalorder %s1017_s5, %s1017_s5 }
  0xd2   :  { %v122_v25 = vmul.f32 0.003921569, %v99_v24  ;;  %v342_v53 = vsel %vm197_vm2, %v341_v27, %v337_v29  ;;  %p1191_p2 = scmp.ne.s32.totalorder %s1017_s5, %s1190_s24  ;;  %p1196_p4 = scmp.lt.s32.totalorder %s1190_s24, %s1190_s24 }
  0xd3   :  { %v346_v40 = vrot.slane %v126_v21, %v1465_v45 }
  0xd4   :  { %v119_v9 = vpop.xlane.xlu1 %118  ;;  %v327_v43 = vrot.slane %v122_v25, %v1465_v45  ;;  %p1197_p5 = por %p1196_p4, %p1195_p3 }
  0xd5   :  { %v127_v41 = vmul.f32 0.003921569, %v119_v9  ;;  %v103_v48 = vpop.xlane.xlu0 %102  ;;  %v347_v59 = vsel %vm204_vm3, %v346_v40, %v342_v53 }
  0xd6   :  { %v123_v51 = vmul.f32 0.003921569, %v103_v48  ;;  %v328_v49 = vsel %vm204_vm3, %v327_v43, %v323_v57  ;;  %v1251_v57 = vmov 2131351028   ;;  %p1198_p6 = pnand %p1197_p5, %p1191_p2 }
  0xd7   :  { %v351_v56 = vrot.slane %v127_v41, %v1472_v62  ;;  %v1249_v41 = vmov 683565275  }
  0xd8   :  { %v332_v37 = vrot.slane %v123_v51, %v1472_v62  ;;  %v1250_v51 = vmov 2475754826  }
  0xd9   :  { %v352_v61 = vsel %vm211_vm4, %v351_v56, %v347_v59 }
  0xda   :  { %v333_v63 = vsel %vm211_vm4, %v332_v37, %v328_v49  ;;  %v1252_v49 = vmov 2102212464  }
  0xdb   :  { %v353_v45 = vsel %vm232_vm5, %v352_v61, %v333_v63 }
  0xdc   :  { %1093 = vmatmul.mubr.msk.f32.vlgmr.msra.gmra.mrb[0].mxu0 %vm234_vm6, %v353_v45  ;;  %v1253_v45 = vmov 920167782  }
 0x1af   :  { %v422_v7 = vpop.f32.mrb[0].mxu0 }
 0x1b0   :  { %v426_v62 = vmax.f32 %v422_v7, 0.0  ;;  %v1094_v8 = vpop.f32.mrb[1].mxu0 }
 0x1b2   :  { %1098 = vmatmul.mubr.msk.f32.vlgmr.msra.gmra.mrb[0].mxu1 %vm427_vm8, %v426_v62 }
 0x1b3   :  { %1101 = vmatpush3.msk.msra.mxu1 %vm431_vm7, %v177_v12  ;;  %1102 = vmatprep.mubr.msk.f32.mxu1 %vm1247_vm1, %v1248_v17 }
 0x1b6   :  { %1103 = vmatmul.mubr.msk.f32.vlgmr.msra.gmra.mrb[2].mxu1 %vm427_vm8, %v426_v62  ;;  %v1254_v62 = vmov 1326507024  }
 0x285   :  { %v1529_v13 = vpop.f32.mrb[0].mxu1 }
 0x286   :  { %v1099_v16 = vpop.f32.mrb[1].mxu1 }
 0x289   :  { %v1531_v19 = vpop.f32.mrb[2].mxu1 }
 0x28a   :  { %v585_v21 = vand.u32 2139095040, %v1531_v19  ;;  %v1104_v24 = vpop.f32.mrb[3].mxu1  ;;  %v1741_v32 = vand.u32 2147483647, %v1531_v19  ;;  %vm584_vm1 = vcmp.lt.s32.totalorder %v1531_v19, 0 }
 0x28c   :  { %v586_v25 = vshrl.u32 %v585_v21, 23  ;;  %v589_v17 = vand.u32 8388607, %v1741_v32 }
 0x28e   :  { %v1051_v27 = vadd.s32 4294967169, %v586_v25  ;;  %v590_v12 = vor.u32 8388608, %v589_v17 }
 0x290   :  { %v592_v29 = vadd.s32 1, %v1051_v27 }
 0x292   :  { %vm593_vm9 = vcmp.gt.s32.totalorder %v592_v29, 0 }
 0x293   :  { %v594_v35 = vsel %vm593_vm9, %v592_v29, 0  ;;  %vm674_vm9 = vweird.f32 %v1531_v19 }
 0x294   :  { %v596_v40 = vand.u32 31, %v594_v35  ;;  %v595_v43 = vshrl.u32 %v594_v35, 5 }
 0x296   :  { %v597_v9 = vsub.s32 32, %v596_v40  ;;  %v599_v48 = vshll.u32 %v1249_v41, %v596_v40  ;;  %v602_v53 = vshll.u32 %v1250_v51, %v596_v40  ;;  %v605_v37 = vshll.u32 %v1251_v57, %v596_v40 }
 0x297   :  { %v608_v63 = vshll.u32 %v1252_v49, %v596_v40  ;;  %v611_v7 = vshll.u32 %v1253_v45, %v596_v40  ;;  %vm614_vm10 = vcmp.lt.s32.totalorder %v595_v43, 1  ;;  %vm617_vm11 = vcmp.lt.s32.totalorder %v595_v43, 4 }
 0x298   :  { %v600_v56 = vshrl.u32 %v1250_v51, %v597_v9  ;;  %v603_v59 = vshrl.u32 %v1251_v57, %v597_v9  ;;  %v606_v61 = vshrl.u32 %v1252_v49, %v597_v9  ;;  %v609_v3 = vshrl.u32 %v1253_v45, %v597_v9 }
 0x299   :  { %v612_v8 = vshrl.u32 %v1254_v62, %v597_v9  ;;  %v598_v57 = vshrl.u32 %v1249_v41, %v597_v9  ;;  %vm616_vm12 = vcmp.lt.s32.totalorder %v595_v43, 3  ;;  %vm615_vm13 = vcmp.lt.s32.totalorder %v595_v43, 2 }
 0x29a   :  { %v601_v16 = vor.u32 %v600_v56, %v599_v48  ;;  %v604_v21 = vor.u32 %v603_v59, %v602_v53  ;;  %v607_v24 = vor.u32 %v606_v61, %v605_v37  ;;  %v610_v25 = vor.u32 %v609_v3, %v608_v63 }
 0x29b   :  { %v613_v27 = vor.u32 %v612_v8, %v611_v7  ;;  %v630_v45 = vshll.u32 %v590_v12, 8 }
 0x29c   :  { %v619_v29 = vsel %vm617_vm11, %v607_v24, 2102212464  ;;  %v622_v35 = vsel %vm614_vm10, %v601_v16, %v604_v21  ;;  %v626_v51 = vsel %vm614_vm10, %v604_v21, %v607_v24  ;;  %v623_v32 = vsel %vm617_vm11, %v610_v25, 920167782 }
 0x29d   :  { %v627_v49 = vsel %vm617_vm11, %v613_v27, 1326507024  ;;  %v624_v22 = vsel %vm616_vm12, %v607_v24, %v623_v32  ;;  %v618_v62 = vsel %vm614_vm10, %v598_v57, %v601_v16  ;;  %v620_v17 = vsel %vm616_vm12, %v604_v21, %v619_v29 }
 0x29e   :  { %v628_v40 = vsel %vm616_vm12, %v610_v25, %v627_v49  ;;  %v625_v48 = vsel %vm615_vm13, %v622_v35, %v624_v22  ;;  %v621_v63 = vsel %vm615_vm13, %v618_v62, %v620_v17  ;;  %v578_v62 = vand.u32 2147483647, %v1529_v13 }
 0x29f   :  { %v629_v53 = vsel %vm615_vm13, %v626_v51, %v628_v40  ;;  %v1540_v37 = vmul.u32.u64.low %v630_v45, %v625_v48  ;;  %v1541_v61 = vmul.u32.u64.high %v630_v45, %v625_v48, %v1540_v37  ;;  %v637_v41 = vmul.u32 %v630_v45, %v621_v63 }
 0x2a0   :  { %v1537_v56 = vmul.u32.u64.low %v630_v45, %v629_v53  ;;  %v1538_v59 = vmul.u32.u64.high %v630_v45, %v629_v53, %v1537_v56  ;;  %vm789_vm10 = vcmp.ge.f32.partialorder %v1529_v13, 0.0 }
 0x2a1   :  { %v640_v9 = vadd.s32 1, %v1541_v61  ;;  %v579_v56 = vsub.f32 0.0, %v578_v62 }
 0x2a2   :  { %vm639_vm14 = vc.u32 %v1538_v59, %v1540_v37  ;;  %v638_v27 = vadd.s32 %v1540_v37, %v1538_v59  ;;  %v1745_v59 = vand.u32 2147483647, %v1531_v19 }
 0x2a3   :  { %v641_v32 = vsel %vm639_vm14, %v640_v9, %v1541_v61 }
 0x2a4   :  { %v642_v43 = vadd.s32 %v641_v32, %v637_v41  ;;  %v580_v41 = vmul.f32 1.442695, %v579_v56  ;;  %vm583_vm2 = vcmp.le.f32.partialorder %v1745_v59, 0.7853982 }
 0x2a6   :  { %v643_v3 = vadd.s32 536870912, %v642_v43 }
 0x2a8   :  { %v644_v7 = vshrl.u32 %v643_v3, 30 }
 0x2aa   :  { %v645_v8 = vshll.u32 %v644_v7, 30  ;;  %v668_v63 = vsub.s32 4, %v644_v7 }
 0x2ac   :  { %v646_v22 = vsub.s32 %v642_v43, %v645_v8  ;;  %v669_v32 = vsel %vm584_vm1, %v668_v63, %v644_v7 }
 0x2ad   :  { %v671_v3 = vsel %vm583_vm2, 0, %v669_v32 }
 0x2ae   :  { %v648_v12 = vsub.s32 0, %v646_v22  ;;  %v778_v8 = vadd.s32 3, %v671_v3 }
 0x2b0   :  { %v1052_v16 = vmin.u32 %v648_v12, %v646_v22  ;;  %v779_v12 = vand.u32 3, %v778_v8 }
 0x2b2   :  { %v650_v21 = vclz %v1052_v16  ;;  %vm784_vm4 = vcmp.eq.s32.totalorder %v779_v12, 2  ;;  %vm781_vm6 = vcmp.eq.s32.totalorder %v779_v12, 0  ;;  %vm780_vm8 = vcmp.lt.s32.totalorder %v779_v12, 2 }
 0x2b4   :  { %v1053_v24 = vadd.s32 4294967294, %v650_v21 }
 0x2b6   :  { %vm1054_vm15 = vcmp.lt.s32.totalorder %v1053_v24, 0 }
 0x2b7   :  { %v653_v25 = vsel %vm1054_vm15, 0, %v1053_v24 }
 0x2b8   :  { %v654_v29 = vsub.s32 32, %v653_v25  ;;  %v658_v35 = vsub.s32 4294967266, %v653_v25  ;;  %v655_v51 = vshll.u32 %v646_v22, %v653_v25  ;;  %v675_v22 = vand.u32 3, %v671_v3 }
 0x2b9   :  { %v809_v3 = vsub.s32 0, %v1459_v33 }
 0x2ba   :  { %v656_v57 = vshrl.u32 %v638_v27, %v654_v29  ;;  %v659_v49 = vadd.s32 127, %v658_v35  ;;  %vm680_vm3 = vcmp.eq.s32.totalorder %v675_v22, 2  ;;  %vm677_vm5 = vcmp.eq.s32.totalorder %v675_v22, 0 }
 0x2bb   :  { %vm676_vm7 = vcmp.lt.s32.totalorder %v675_v22, 2 }
 0x2bc   :  { %v657_v40 = vor.u32 %v656_v57, %v655_v51  ;;  %v660_v45 = vshll.u32 %v659_v49, 23 }
 0x2be   :  { %v661_v17 = vor.u32 4788187, %v660_v45  ;;  %v664_v53 = vcvt.s32.f32 %v657_v40 }
 0x2c0   :  { %v662_v48 = vand.u32 2147483647, %v661_v17 }
 0x2c2   :  { %v665_v61 = vmul.f32 %v664_v53, %v662_v48 }
 0x2c4   :  { %v666_v9 = vxor.u32 2147483648, %v665_v61 }
 0x2c6   :  { %v667_v37 = vsel %vm584_vm1, %v666_v9, %v665_v61 }
 0x2c7   :  { %v670_v43 = vsel %vm583_vm2, %v1531_v19, %v667_v37 }
 0x2c8   :  { %1138 = vcosq.f32 %v670_v43 }
 0x2c9   :  { %1140 = vsinq.f32 %v670_v43 }
 0x2ca   :  { %1142 = vpow2.f32 %v580_v41 }
 0x2d2   :  { %v1139_v16 = vpop.eup %1138 }
 0x2d3   :  { %v1141_v21 = vpop.eup %1140  ;;  %v681_v24 = vxor.u32 2147483648, %v1139_v16 }
 0x2d4   :  { %v1143_v25 = vpop.eup %1142  ;;  %v678_v27 = vxor.u32 2147483648, %v1141_v21 }
 0x2d5   :  { %v682_v29 = vsel %vm680_vm3, %v681_v24, %v1141_v21  ;;  %v786_v7 = vsel %vm784_vm4, %v681_v24, %v1141_v21  ;;  %v794_v40 = vsub.f32 0.0, %v1143_v25  ;;  %v798_v19 = vsel %vm789_vm10, 1.0, %v1143_v25 }
 0x2d6   :  { %v679_v35 = vsel %vm677_vm5, %v1139_v16, %v678_v27  ;;  %v783_v51 = vsel %vm781_vm6, %v1139_v16, %v678_v27  ;;  %v828_v21 = vsub.s32 1, %v1459_v33 }
 0x2d7   :  { %v683_v57 = vsel %vm676_vm7, %v679_v35, %v682_v29  ;;  %v787_v49 = vsel %vm780_vm8, %v783_v51, %v786_v7 }
 0x2d8   :  { %v684_v45 = vsel %vm674_vm9, nan, %v683_v57  ;;  %v788_v62 = vsel %vm674_vm9, nan, %v787_v49 }
 0x2d9   :  { %v790_v17 = vmul.f32 %v1143_v25, %v684_v45  ;;  %v792_v48 = vadd.f32 %v1143_v25, %v684_v45  ;;  %v795_v53 = vmul.f32 %v794_v40, %v788_v62  ;;  %v796_v56 = vsub.f32 0.0, %v788_v62 }
 0x2db   :  { %v791_v61 = vadd.f32 1.0, %v790_v17  ;;  %v797_v63 = vsel %vm789_vm10, %v795_v53, %v796_v56 }
 0x2dc   :  { %v800_v59 = vmul.f32 %v797_v63, %v797_v63  ;;  %v805_v8 = vsub.f32 0.0, %v797_v63 }
 0x2dd   :  { %v793_v9 = vsel %vm789_vm10, %v791_v61, %v792_v48 }
 0x2de   :  { %v799_v41 = vmul.f32 %v793_v9, %v793_v9 }
 0x2e0   :  { %v801_v37 = vadd.f32 %v800_v59, %v799_v41 }
 0x2e2   :  { %1144 = vrcp.f32 %v801_v37 }
 0x2ec   :  { %v1145_v32 = vpop.eup %1144 }
 0x2ed   :  { %v803_v43 = vmul.f32 %v1145_v32, %v798_v19 }
 0x2ef   :  { %v804_v22 = vmul.f32 %v803_v43, %v793_v9  ;;  %v806_v12 = vmul.f32 %v805_v8, %v803_v43 }
 0x2f1   :  { %v810_v16 = vrot.slane %v804_v22, %v809_v3  ;;  %v829_v13 = vrot.slane %v804_v22, %v828_v21  ;;  %v848_v24 = vrot.slane %v806_v12, %v809_v3  ;;  %v867_v25 = vrot.slane %v806_v12, %v828_v21 }
 0x2f3   :  { %816 = vbcast.lane.b32.xlu1 %v810_v16, 264  ;;  %812 = vbcast.lane.b32.xlu0 %v810_v16, 256 }
 0x2f7   :  { %820 = vbcast.lane.b32.xlu1 %v810_v16, 272  ;;  %831 = vbcast.lane.b32.xlu0 %v829_v13, 256 }
 0x2fb   :  { %824 = vbcast.lane.b32.xlu1 %v810_v16, 280  ;;  %839 = vbcast.lane.b32.xlu0 %v829_v13, 272 }
 0x2ff   :  { %835 = vbcast.lane.b32.xlu1 %v829_v13, 264  ;;  %850 = vbcast.lane.b32.xlu0 %v848_v24, 256 }
 0x303   :  { %843 = vbcast.lane.b32.xlu1 %v829_v13, 280  ;;  %858 = vbcast.lane.b32.xlu0 %v848_v24, 272 }
 0x307   :  { %854 = vbcast.lane.b32.xlu1 %v848_v24, 264  ;;  %869 = vbcast.lane.b32.xlu0 %v867_v25, 256 }
 0x30b   :  { %862 = vbcast.lane.b32.xlu1 %v848_v24, 280  ;;  %877 = vbcast.lane.b32.xlu0 %v867_v25, 272 }
 0x30f   :  { %873 = vbcast.lane.b32.xlu1 %v867_v25, 264 }
 0x313   :  { %881 = vbcast.lane.b32.xlu1 %v867_v25, 280 }
 0x365   :  { %v817_v33 = vpop.permute.xlu1 %816  ;;  %v813_v27 = vpop.permute.xlu0 %812 }
 0x366   :  { %v1557_v57 = vmul.f32 %v817_v33, %v1387_v34  ;;  %v1560_v49 = vmul.f32 %v817_v33, %v1381_v30  ;;  %v1563_v40 = vmul.f32 %v817_v33, %v1346_v10  ;;  %v1566_v45 = vmul.f32 %v817_v33, %v1348_v11 }
 0x367   :  { %v883_v62 = vmul.f32 %v813_v27, %v1391_v36  ;;  %v884_v17 = vmul.f32 %v813_v27, %v1383_v31  ;;  %v963_v48 = vmul.f32 %v813_v27, %v1331_v2  ;;  %v964_v53 = vmul.f32 %v813_v27, %v1335_v4 }
 0x369   :  { %v821_v29 = vpop.permute.xlu1 %820  ;;  %v832_v7 = vpop.permute.xlu0 %831 }
 0x36a   :  { %v887_v56 = vmul.f32 %v821_v29, %v1419_v52  ;;  %v888_v61 = vmul.f32 %v821_v29, %v1411_v47  ;;  %v967_v63 = vmul.f32 %v821_v29, %v1363_v20  ;;  %v968_v9 = vmul.f32 %v821_v29, %v1355_v15 }
 0x36b   :  { %v1577_v37 = vmul.f32 %v832_v7, %v1405_v44  ;;  %v1580_v32 = vmul.f32 %v832_v7, %v1397_v39  ;;  %v971_v19 = vmul.f32 %v832_v7, %v1327_v0  ;;  %v972_v43 = vmul.f32 %v832_v7, %v1329_v1 }
 0x36d   :  { %v825_v35 = vpop.permute.xlu1 %824  ;;  %v840_v51 = vpop.permute.xlu0 %839 }
 0x36e   :  { %v1589_v16 = vmul.f32 %v825_v35, %v1433_v60  ;;  %v1592_v21 = vmul.f32 %v825_v35, %v1425_v55  ;;  %v1595_v13 = vmul.f32 %v825_v35, %v1377_v28  ;;  %v1598_v24 = vmul.f32 %v825_v35, %v1369_v23 }
 0x36f   :  { %v1606_v29 = vmul.f32 %v840_v51, %v1409_v46  ;;  %v1609_v7 = vmul.f32 %v840_v51, %v1359_v18 }
 0x371   :  { %v836_v41 = vpop.permute.xlu1 %835  ;;  %v851_v59 = vpop.permute.xlu0 %850 }
 0x372   :  { %v899_v3 = vmul.f32 %v851_v59, %v1331_v2  ;;  %v900_v8 = vmul.f32 %v851_v59, %v1335_v4  ;;  %v947_v22 = vmul.f32 %v851_v59, %v1391_v36  ;;  %v948_v12 = vmul.f32 %v851_v59, %v1383_v31 }
 0x373   :  { %v1603_v31 = vmul.f32 %v840_v51, %v1415_v50  ;;  %v1612_v59 = vmul.f32 %v840_v51, %v1353_v14  ;;  %v1624_v51 = vmul.f32 %v836_v41, %v1395_v38 }
 0x374   :  { %v915_v25 = vsub.f32 %v883_v62, %v899_v3  ;;  %v916_v2 = vsub.f32 %v884_v17, %v900_v8  ;;  %v979_v33 = vadd.f32 %v963_v48, %v947_v22  ;;  %v980_v4 = vadd.f32 %v964_v53, %v948_v12 }
 0x375   :  { %v1600_v27 = vpop.permute.xlu1 %843  ;;  %v859_v36 = vpop.permute.xlu0 %858  ;;  %v1621_v53 = vmul.f32 %v836_v41, %v1401_v42  ;;  %v1627_v3 = vmul.f32 %v836_v41, %v1337_v5  ;;  %v1630_v8 = vmul.f32 %v836_v41, %v1339_v6 }
 0x376   :  { %931 = vst [vmem:[#allocation7] sm:$0xff] %v915_v25  ;;  %932 = vst.msk [vmem:[#allocation7 + $0x8] sm:$0xff] %vm87_vm0, %v916_v2  ;;  %v903_v35 = vmul.f32 %v859_v36, %v1363_v20  ;;  %v904_v62 = vmul.f32 %v859_v36, %v1355_v15  ;;  %v951_v17 = vmul.f32 %v859_v36, %v1419_v52 }
 0x377   :  { %995 = vst [vmem:[#allocation8] sm:$0xff] %v979_v33  ;;  %996 = vst.msk [vmem:[#allocation8 + $0x8] sm:$0xff] %vm87_vm0, %v980_v4  ;;  %v952_v48 = vmul.f32 %v859_v36, %v1411_v47 }
 0x378   :  { %v919_v22 = vsub.f32 %v887_v56, %v903_v35  ;;  %v920_v20 = vsub.f32 %v888_v61, %v904_v62  ;;  %v983_v12 = vadd.f32 %v967_v63, %v951_v17 }
 0x379   :  { %v984_v15 = vadd.f32 %v968_v9, %v952_v48  ;;  %v855_v25 = vpop.permute.xlu1 %854  ;;  %v870_v52 = vpop.permute.xlu0 %869 }
 0x37a   :  { %v901_v47 = vmul.f32 %v855_v25, %v1346_v10  ;;  %v902_v2 = vmul.f32 %v855_v25, %v1348_v11  ;;  %v949_v33 = vmul.f32 %v855_v25, %v1387_v34  ;;  %v950_v4 = vmul.f32 %v855_v25, %v1381_v30  ;;  %935 = vst [vmem:[#allocation7 + $0x20] sm:$0xff] %v919_v22 }
 0x37b   :  { %936 = vst.msk [vmem:[#allocation7 + $0x28] sm:$0xff] %vm87_vm0, %v920_v20  ;;  %999 = vst [vmem:[#allocation8 + $0x20] sm:$0xff] %v983_v12  ;;  %v907_v56 = vmul.f32 %v870_v52, %v1327_v0  ;;  %v908_v61 = vmul.f32 %v870_v52, %v1329_v1  ;;  %v955_v63 = vmul.f32 %v870_v52, %v1405_v44 }
 0x37c   :  { %1000 = vst.msk [vmem:[#allocation8 + $0x28] sm:$0xff] %vm87_vm0, %v984_v15  ;;  %v956_v10 = vmul.f32 %v870_v52, %v1397_v39  ;;  %v917_v11 = vsub.f32 %v1557_v57, %v901_v47  ;;  %v918_v34 = vsub.f32 %v1560_v49, %v902_v2  ;;  %v981_v30 = vadd.f32 %v1563_v40, %v949_v33 }
 0x37d   :  { %v982_v9 = vadd.f32 %v1566_v45, %v950_v4  ;;  %v923_v41 = vsub.f32 %v1577_v37, %v907_v56  ;;  %v924_v36 = vsub.f32 %v1580_v32, %v908_v61  ;;  %v987_v35 = vadd.f32 %v971_v19, %v955_v63  ;;  %v863_v62 = vpop.permute.xlu1 %862  ;;  %v878_v1 = vpop.permute.xlu0 %877 }
 0x37e   :  { %v988_v0 = vadd.f32 %v972_v43, %v956_v10  ;;  %933 = vst [vmem:[#allocation7 + $0x10] sm:$0xff] %v917_v11  ;;  %934 = vst.msk [vmem:[#allocation7 + $0x18] sm:$0xff] %vm87_vm0, %v918_v34  ;;  %v905_v39 = vmul.f32 %v863_v62, %v1377_v28  ;;  %v906_v44 = vmul.f32 %v863_v62, %v1369_v23 }
 0x37f   :  { %997 = vst [vmem:[#allocation8 + $0x10] sm:$0xff] %v981_v30  ;;  %998 = vst.msk [vmem:[#allocation8 + $0x18] sm:$0xff] %vm87_vm0, %v982_v9  ;;  %v953_v57 = vmul.f32 %v863_v62, %v1433_v60  ;;  %v954_v49 = vmul.f32 %v863_v62, %v1425_v55  ;;  %v911_v40 = vmul.f32 %v878_v1, %v1359_v18 }
 0x380   :  { %939 = vst [vmem:[#allocation7 + $0x40] sm:$0xff] %v923_v41  ;;  %940 = vst.msk [vmem:[#allocation7 + $0x48] sm:$0xff] %vm87_vm0, %v924_v36  ;;  %v912_v45 = vmul.f32 %v878_v1, %v1353_v14  ;;  %v959_v37 = vmul.f32 %v878_v1, %v1415_v50  ;;  %v960_v28 = vmul.f32 %v878_v1, %v1409_v46 }
 0x381   :  { %1003 = vst [vmem:[#allocation8 + $0x40] sm:$0xff] %v987_v35  ;;  %1004 = vst.msk [vmem:[#allocation8 + $0x48] sm:$0xff] %vm87_vm0, %v988_v0  ;;  %v921_v23 = vsub.f32 %v1589_v16, %v905_v39  ;;  %v922_v60 = vsub.f32 %v1592_v21, %v906_v44  ;;  %v985_v55 = vadd.f32 %v1595_v13, %v953_v57  ;;  %v874_v17 = vpop.permute.xlu1 %873 }
 0x382   :  { %v986_v32 = vadd.f32 %v1598_v24, %v954_v49  ;;  %v927_v19 = vsub.f32 %v1603_v31, %v911_v40  ;;  %v928_v43 = vsub.f32 %v1606_v29, %v912_v45  ;;  %v991_v18 = vadd.f32 %v1609_v7, %v959_v37  ;;  %v1746_v29 = vld [vmem:[#allocation14_spill] sm:$0xff] }
 0x383   :  { %v992_v14 = vadd.f32 %v1612_v59, %v960_v28  ;;  %937 = vst [vmem:[#allocation7 + $0x30] sm:$0xff] %v921_v23  ;;  %938 = vst.msk [vmem:[#allocation7 + $0x38] sm:$0xff] %vm87_vm0, %v922_v60  ;;  %v909_v46 = vmul.f32 %v874_v17, %v1337_v5  ;;  %v910_v50 = vmul.f32 %v874_v17, %v1339_v6 }
 0x384   :  { %1001 = vst [vmem:[#allocation8 + $0x30] sm:$0xff] %v985_v55  ;;  %1002 = vst.msk [vmem:[#allocation8 + $0x38] sm:$0xff] %vm87_vm0, %v986_v32  ;;  %v957_v16 = vmul.f32 %v874_v17, %v1401_v42  ;;  %v958_v21 = vmul.f32 %v874_v17, %v1395_v38  ;;  %v897_v6 = vmul.f32 %v1600_v27, %v1429_v58 }
 0x385   :  { %943 = vst [vmem:[#allocation7 + $0x60] sm:$0xff] %v927_v19  ;;  %944 = vst.msk [vmem:[#allocation7 + $0x68] sm:$0xff] %vm87_vm0, %v928_v43  ;;  %v925_v13 = vsub.f32 %v1621_v53, %v909_v46  ;;  %v926_v24 = vsub.f32 %v1624_v51, %v910_v50  ;;  %v898_v38 = vmul.f32 %v1600_v27, %v1423_v54  ;;  %v882_v59 = vpop.permute.xlu1 %881 }
 0x386   :  { %1007 = vst [vmem:[#allocation8 + $0x60] sm:$0xff] %v991_v18  ;;  %1008 = vst.msk [vmem:[#allocation8 + $0x68] sm:$0xff] %vm87_vm0, %v992_v14  ;;  %v989_v31 = vadd.f32 %v1627_v3, %v957_v16  ;;  %v990_v5 = vadd.f32 %v1630_v8, %v958_v21  ;;  %v977_v42 = vmul.f32 %v1600_v27, %v1373_v26 }
 0x387   :  { %v978_v7 = vmul.f32 %v1600_v27, %v1746_v29  ;;  %941 = vst [vmem:[#allocation7 + $0x50] sm:$0xff] %v925_v13  ;;  %942 = vst.msk [vmem:[#allocation7 + $0x58] sm:$0xff] %vm87_vm0, %v926_v24  ;;  %v913_v48 = vmul.f32 %v882_v59, %v1373_v26  ;;  %v914_v53 = vmul.f32 %v882_v59, %v1746_v29 }
 0x388   :  { %1005 = vst [vmem:[#allocation8 + $0x50] sm:$0xff] %v989_v31  ;;  %1006 = vst.msk [vmem:[#allocation8 + $0x58] sm:$0xff] %vm87_vm0, %v990_v5  ;;  %v961_v51 = vmul.f32 %v882_v59, %v1429_v58  ;;  %v962_v3 = vmul.f32 %v882_v59, %v1423_v54 }
 0x389   :  { %v929_v27 = vsub.f32 %v897_v6, %v913_v48  ;;  %v930_v8 = vsub.f32 %v898_v38, %v914_v53 }
 0x38a   :  { %v993_v22 = vadd.f32 %v977_v42, %v961_v51  ;;  %v994_v20 = vadd.f32 %v978_v7, %v962_v3 }
 0x38b   :  { %945 = vst [vmem:[#allocation7 + $0x70] sm:$0xff] %v929_v27  ;;  %946 = vst.msk [vmem:[#allocation7 + $0x78] sm:$0xff] %vm87_vm0, %v930_v8 }
 0x38c   :  { %1009 = vst [vmem:[#allocation8 + $0x70] sm:$0xff] %v993_v22  ;;  %1010 = vst.msk [vmem:[#allocation8 + $0x78] sm:$0xff] %vm87_vm0, %v994_v20 }
 0x38d   :  { %1201 = shalt.err (!%p1198_p6)
}
 0x38e   :  { %s1202_s1 = scalar_lea.hbm %s1739_s6, 2048 }
 0x38f   :  { %p1203_p7 = scmp.ne.s32.totalorder %s1739_s6, %s1202_s1  ;;  %p1206_p8 = scmp.lt.u32.totalorder %s1202_s1, %s1739_s6 }
 0x391   :  { %p1208_p9 = pnand %p1206_p8, %p1203_p7 }
 0x393   :  { %1211 = shalt.err (!%p1208_p9)
}
 0x394   :  { %1022 = dma.vmem_to_hbm [thread:$0]  %s1017_s5, 2048, %s1739_s6, [#allocation4], %s1243_s11, %s1243_s11, %s1244_s12  }
 0x395   :  { %s1212_s9 = scalar_lea.vmem %s1694_s23, 2048  ;;  %p1217_p11 = scmp.lt.s32.totalorder %s1694_s23, %s1694_s23 }
 0x396   :  { %p1213_p10 = scmp.ne.s32.totalorder %s1694_s23, %s1212_s9  ;;  %p1218_p12 = scmp.lt.s32.totalorder %s1212_s9, %s1212_s9 }
 0x398   :  { %p1219_p13 = por %p1218_p12, %p1217_p11 }
 0x39a   :  { %p1220_p0 = pnand %p1219_p13, %p1213_p10 }
 0x39c   :  { %1223 = shalt.err (!%p1220_p0)
}
 0x39d   :  { %s1224_s13 = scalar_lea.hbm %s1740_s7, 2048 }
 0x39e   :  { %p1225_p1 = scmp.ne.s32.totalorder %s1740_s7, %s1224_s13  ;;  %p1228_p2 = scmp.lt.u32.totalorder %s1224_s13, %s1740_s7 }
 0x3a0   :  { %p1230_p3 = pnand %p1228_p2, %p1225_p1 }
 0x3a2   :  { %1233 = shalt.err (!%p1230_p3)
}
 0x3a3   :  { %1034 = dma.vmem_to_hbm [thread:$0]  %s1694_s23, 2048, %s1740_s7, [#allocation9], %s1243_s11, %s1243_s11, %s1244_s12  }
 0x3a4   :  { %1238 = dma.done.wait [#allocation4], 2048  }
 0x3a5   :  { %1239 = vsyncadd [#allocation4], 4294965248 }
 0x3a6   :  { %1240 = dma.done.wait [#allocation9], 2048  }
 0x3a7   :  { %1241 = vsyncadd [#allocation9], 4294965248 }
 0x3a8   :  { %1041 = vsyncpa [#allocation3], 1 }
 0x3a9   :  { %1042 = vsyncpa [#allocation6], 1 }
 0x3aa   :  { %1043 = vsyncpa [#allocation4], 1 }
 0x3ab   :  { %1044 = vsyncpa [#allocation9], 1 }

</bundles_post_ra>
